<compile_context>
chip_gen: v7x
topology: tpu7x:2x2x1
jax: 0.10.0
libtpu: 0.0.40
codegen_flags: <defaults>
</compile_context>

<pallas_src>
import functools

import jax
import jax.numpy as jnp
from jax.experimental import pallas as pl
from jax.experimental.pallas import tpu as pltpu


def _nv_kernel(wh_sc_ref, st_bc_ref, m_store_ref, m_wh_ref,
               store_inv_ref, wh_inv_ref,
               store_alloc_ref, wh_alloc_ref):
    # Resident per-store parameters: row 0 = base stock, row 1 = caps.
    base_stock = st_bc_ref[0:1, :]                                   # (1, S)
    caps = st_bc_ref[1:2, :]                                         # (1, S)
    wh_base = wh_sc_ref[0]                                           # scalar (SMEM)
    wh_cap = wh_sc_ref[1]                                            # scalar (SMEM)

    # ---- store allocation (rows = samples on sublanes, cols = stores) ----
    x = store_inv_ref[...]                                           # (nb, S*D)
    # Per-store sum over the D inventory dims: tiny constant matmul on MXU.
    inv_pos = jnp.dot(x, m_store_ref[...],
                      preferred_element_type=jnp.float32)            # (nb, S)
    uncapped = base_stock - inv_pos                                  # (nb, S)
    intermediate = jnp.minimum(jnp.maximum(uncapped, 0.0), caps)     # (nb, S)

    wh = wh_inv_ref[...]                                             # (nb, W*Dw)
    total_limiting = wh[:, 0:1]                                      # (nb, 1) == wh_inv[:, 0, 0]
    sum_alloc = jnp.sum(intermediate, axis=1, keepdims=True)         # (nb, 1)
    scale = jnp.minimum(total_limiting / (sum_alloc + 1e-15), 1.0)   # (nb, 1)
    store_alloc_ref[...] = intermediate * scale                      # (nb, S)

    # ---- warehouse allocation ----
    wh_pos = jnp.dot(wh, m_wh_ref[...],
                     preferred_element_type=jnp.float32)             # (nb, W)
    wh_alloc_ref[...] = jnp.minimum(jnp.maximum(wh_base - wh_pos, 0.0), wh_cap)


@functools.partial(jax.jit, static_argnames=("block_n",))
def transformed_nv_forward(params, store_inventories, warehouse_inventories,
                           *, block_n=8192):
    """Pallas implementation of TransformedNV_NoQuantile_SeparateStores.forward."""
    N, S, D = store_inventories.shape
    _, W, Dw = warehouse_inventories.shape
    f32 = jnp.float32

    # ---- hoist the parameter-only MLPs (network input is the constant 0.0) ----
    # relu(W1 * 0 + b1) == relu(b1); second layer is a tiny contraction over H.
    st_h = jnp.maximum(params['st_b1'], 0.0)                                   # (S, H)
    st_out = jnp.sum(params['st_w2'] * st_h[None], axis=-1) + params['st_b2']  # (2, S)
    st_bc = st_out.astype(f32)                                                 # base stock / caps

    wh_h = jnp.maximum(params['wh_b1'], 0.0)                                   # (1, H)
    wh_out = jnp.sum(params['wh_w2'] * wh_h, axis=-1) + params['wh_b2'][:, 0]  # (2,)
    wh_sc = wh_out.astype(f32)                                                 # [wh_base, wh_cap]

    # ---- tiny selector matrices for the in-kernel D-group sums (resident) ----
    m_store = jnp.repeat(jnp.eye(S, dtype=f32), D, axis=0)                     # (S*D, S)
    m_wh = jnp.repeat(jnp.eye(W, dtype=f32), Dw, axis=0)                       # (W*Dw, W)

    # ---- free, contiguous reshapes: no transposes or pads in the wrapper ----
    store_flat = store_inventories.reshape(N, S * D).astype(f32)               # (N, S*D)
    wh_flat = warehouse_inventories.reshape(N, W * Dw).astype(f32)             # (N, W*Dw)

    # Block over samples on the sublane axis; partial last block is masked by Pallas.
    if N <= block_n:
        nb = N
    else:
        nb = max(8, (block_n // 8) * 8)
    grid = (pl.cdiv(N, nb),)

    smem = pl.BlockSpec(memory_space=pltpu.MemorySpace.SMEM)

    store_alloc, wh_alloc = pl.pallas_call(
        _nv_kernel,
        out_shape=(
            jax.ShapeDtypeStruct((N, S), f32),
            jax.ShapeDtypeStruct((N, W), f32),
        ),
        grid=grid,
        in_specs=[
            smem,                                                # (2,) warehouse scalars
            pl.BlockSpec((2, S), lambda i: (0, 0)),              # base stock / caps (resident)
            pl.BlockSpec((S * D, S), lambda i: (0, 0)),          # store D-sum selector (resident)
            pl.BlockSpec((W * Dw, W), lambda i: (0, 0)),         # warehouse D-sum selector
            pl.BlockSpec((nb, S * D), lambda i: (i, 0)),         # store inventories tile
            pl.BlockSpec((nb, W * Dw), lambda i: (i, 0)),        # warehouse inventories tile
        ],
        out_specs=(
            pl.BlockSpec((nb, S), lambda i: (i, 0)),
            pl.BlockSpec((nb, W), lambda i: (i, 0)),
        ),
        compiler_params=pltpu.CompilerParams(
            dimension_semantics=("parallel",),
            vmem_limit_bytes=64 * 1024 * 1024,
        ),
    )(wh_sc, st_bc, m_store, m_wh, store_flat, wh_flat)

    # Already in the PyTorch output layout: (N, S) / (N, W) — no back-transpose.
    return {'stores': store_alloc, 'warehouses': wh_alloc}


def init_params(key, n_stores, hidden=16):
    """Deterministic synthetic parameters.

    Store nets: Linear(1 -> hidden) -> ReLU -> Linear(hidden -> 2), one per store.
    Warehouse net: same architecture, shared across samples.
    """
    ks = jax.random.split(key, 8)
    return dict(
        st_w1=0.5 * jax.random.normal(ks[0], (n_stores, hidden), jnp.float32),
        st_b1=0.5 * jax.random.normal(ks[1], (n_stores, hidden), jnp.float32),
        st_w2=0.5 * jax.random.normal(ks[2], (2, n_stores, hidden), jnp.float32),
        st_b2=0.5 * jax.random.normal(ks[3], (2, n_stores), jnp.float32),
        wh_w1=0.5 * jax.random.normal(ks[4], (1, hidden), jnp.float32),
        wh_b1=0.5 * jax.random.normal(ks[5], (1, hidden), jnp.float32),
        wh_w2=0.5 * jax.random.normal(ks[6], (2, hidden), jnp.float32),
        wh_b2=0.5 * jax.random.normal(ks[7], (2, 1), jnp.float32),
    )


def reference_forward(params, store_inv, wh_inv):
    """Plain-JAX reference mirroring the PyTorch forward exactly."""
    x0 = 0.0
    h = jnp.maximum(params['st_w1'] * x0 + params['st_b1'], 0.0)               # (S, H)
    st_out = jnp.sum(params['st_w2'] * h[None], axis=-1) + params['st_b2']     # (2, S)
    base_stock, caps = st_out[0], st_out[1]                                    # (S,), (S,)

    wh_h = jnp.maximum(params['wh_w1'] * x0 + params['wh_b1'], 0.0)            # (1, H)
    wh_out = jnp.sum(params['wh_w2'] * wh_h, axis=-1, keepdims=True) + params['wh_b2']
    wh_base, wh_cap = wh_out[0, 0], wh_out[1, 0]

    uncapped = base_stock[None, :] - store_inv.sum(axis=2)
    intermediate = jnp.minimum(jnp.maximum(uncapped, 0.0), caps[None, :])
    total_limiting = wh_inv[:, 0, 0]
    sum_alloc = intermediate.sum(axis=1)
    scale = jnp.minimum(total_limiting / (sum_alloc + 1e-15), 1.0)
    store_alloc = intermediate * scale[:, None]

    wh_pos = wh_inv.sum(axis=2)
    wh_alloc = jnp.minimum(jnp.maximum(wh_base - wh_pos, 0.0), wh_cap)
    return {'stores': store_alloc, 'warehouses': wh_alloc}


def _check(out, ref):
    assert out['stores'].shape == ref['stores'].shape
    assert out['warehouses'].shape == ref['warehouses'].shape
    assert jnp.allclose(out['stores'], ref['stores'], atol=1e-4, rtol=1e-4)
    assert jnp.allclose(out['warehouses'], ref['warehouses'], atol=1e-4, rtol=1e-4)


if __name__ == "__main__":
    S, W = 4, 1                       # n_stores, n_warehouses
    STORE_INV_DIM, WH_INV_DIM, HIDDEN = 3, 2, 16

    key = jax.random.PRNGKey(0)
    k_params, k_si, k_wi, k_si2, k_wi2 = jax.random.split(key, 5)
    params = init_params(k_params, n_stores=S, hidden=HIDDEN)

    # ---- small case: single full-array block ----
    N_small = 8
    store_inv = jax.random.uniform(
        k_si, (N_small, S, STORE_INV_DIM), jnp.float32, minval=0.0, maxval=2.0)
    wh_inv = jax.random.uniform(
        k_wi, (N_small, W, WH_INV_DIM), jnp.float32, minval=0.0, maxval=3.0)
    out = transformed_nv_forward(params, store_inv, wh_inv)
    jax.block_until_ready(out)
    _check(out, reference_forward(params, store_inv, wh_inv))

    # ---- larger case: exercises the N-grid + masked partial last block ----
    N_big = 1000
    store_inv_b = jax.random.uniform(
        k_si2, (N_big, S, STORE_INV_DIM), jnp.float32, minval=0.0, maxval=2.0)
    wh_inv_b = jax.random.uniform(
        k_wi2, (N_big, W, WH_INV_DIM), jnp.float32, minval=0.0, maxval=3.0)
    out_b = transformed_nv_forward(params, store_inv_b, wh_inv_b, block_n=256)
    jax.block_until_ready(out_b)
    _check(out_b, reference_forward(params, store_inv_b, wh_inv_b))

    print("KERNEL_OK")
</pallas_src>

<mosaic_0001>
module attributes {stable_mosaic.version = 11 : i64} {
  func.func @_nv_kernel(%arg0: i32, %arg1: memref<2xf32, #tpu.memory_space<smem>>, %arg2: memref<2x4xf32, #tpu.memory_space<vmem>>, %arg3: memref<12x4xf32, #tpu.memory_space<vmem>>, %arg4: memref<2x1xf32, #tpu.memory_space<vmem>>, %arg5: memref<8x12xf32, #tpu.memory_space<vmem>>, %arg6: memref<8x2xf32, #tpu.memory_space<vmem>>, %arg7: memref<8x4xf32, #tpu.memory_space<vmem>>, %arg8: memref<8x1xf32, #tpu.memory_space<vmem>>) attributes {dimension_semantics = [#tpu.dimension_semantics<parallel>], iteration_bounds = array<i64: 1>, scalar_prefetch = 0 : i64, scratch_operands = 0 : i64, tpu.core_type = #tpu.core_type<tc>, window_params = [{transform_indices = @transform_0, window_bounds = array<i64: 2>}, {pipeline_mode = #tpu.pipeline_mode<synchronous>, transform_indices = @transform_1, window_bounds = array<i64: 2, 4>}, {pipeline_mode = #tpu.pipeline_mode<synchronous>, transform_indices = @transform_2, window_bounds = array<i64: 12, 4>}, {pipeline_mode = #tpu.pipeline_mode<synchronous>, transform_indices = @transform_3, window_bounds = array<i64: 2, 1>}, {transform_indices = @transform_4, window_bounds = array<i64: 8, 12>}, {transform_indices = @transform_5, window_bounds = array<i64: 8, 2>}, {transform_indices = @transform_6, window_bounds = array<i64: 8, 4>}, {transform_indices = @transform_7, window_bounds = array<i64: 8, 1>}]} {
    %c0 = arith.constant 0 : index
    %c0_0 = arith.constant 0 : index
    %0 = vector.load %arg2[%c0, %c0_0] : memref<2x4xf32, #tpu.memory_space<vmem>>, vector<1x4xf32>
    %c1 = arith.constant 1 : index
    %c0_1 = arith.constant 0 : index
    %1 = vector.load %arg2[%c1, %c0_1] : memref<2x4xf32, #tpu.memory_space<vmem>>, vector<1x4xf32>
    %c0_2 = arith.constant 0 : index
    %2 = memref.load %arg1[%c0_2] : memref<2xf32, #tpu.memory_space<smem>>
    %c1_3 = arith.constant 1 : index
    %3 = memref.load %arg1[%c1_3] : memref<2xf32, #tpu.memory_space<smem>>
    %c0_4 = arith.constant 0 : index
    %c0_5 = arith.constant 0 : index
    %4 = vector.load %arg5[%c0_4, %c0_5] : memref<8x12xf32, #tpu.memory_space<vmem>>, vector<8x12xf32>
    %c0_6 = arith.constant 0 : index
    %c0_7 = arith.constant 0 : index
    %5 = vector.load %arg3[%c0_6, %c0_7] : memref<12x4xf32, #tpu.memory_space<vmem>>, vector<12x4xf32>
    %cst = arith.constant dense<0.000000e+00> : vector<8x4xf32>
    %6 = tpu.matmul %4, %5, %cst {dimension_numbers = #tpu.dot_dimension_numbers<[1], [0], [0], [1], [0, 0, 1, 1], [], []>} : vector<8x12xf32>, vector<12x4xf32>, vector<8x4xf32> -> vector<8x4xf32>
    %7 = vector.broadcast %0 : vector<1x4xf32> to vector<8x4xf32>
    %8 = arith.subf %7, %6 : vector<8x4xf32>
    %cst_8 = arith.constant 0.000000e+00 : f32
    %9 = vector.broadcast %cst_8 : f32 to vector<8x4xf32>
    %10 = arith.maximumf %8, %9 : vector<8x4xf32>
    %11 = vector.broadcast %1 : vector<1x4xf32> to vector<8x4xf32>
    %12 = arith.minimumf %10, %11 : vector<8x4xf32>
    %c0_9 = arith.constant 0 : index
    %c0_10 = arith.constant 0 : index
    %13 = vector.load %arg6[%c0_9, %c0_10] : memref<8x2xf32, #tpu.memory_space<vmem>>, vector<8x2xf32>
    %14 = vector.extract_strided_slice %13 {offsets = [0, 0], sizes = [8, 1], strides = [1, 1]} : vector<8x2xf32> to vector<8x1xf32>
    %cst_11 = arith.constant dense<0.000000e+00> : vector<8xf32>
    %15 = vector.multi_reduction <add>, %12, %cst_11 [1] : vector<8x4xf32> to vector<8xf32>
    %16 = vector.shape_cast %15 : vector<8xf32> to vector<8x1xf32>
    %cst_12 = arith.constant 1.000000e-15 : f32
    %17 = vector.broadcast %cst_12 : f32 to vector<8x1xf32>
    %18 = arith.addf %16, %17 : vector<8x1xf32>
    %19 = arith.divf %14, %18 : vector<8x1xf32>
    %cst_13 = arith.constant 1.000000e+00 : f32
    %20 = vector.broadcast %cst_13 : f32 to vector<8x1xf32>
    %21 = arith.minimumf %19, %20 : vector<8x1xf32>
    %22 = vector.broadcast %21 : vector<8x1xf32> to vector<8x4xf32>
    %23 = arith.mulf %12, %22 : vector<8x4xf32>
    %c0_14 = arith.constant 0 : index
    %c0_15 = arith.constant 0 : index
    %24 = vector.load %arg7[%c0_14, %c0_15] : memref<8x4xf32, #tpu.memory_space<vmem>>, vector<8x4xf32>
    tpu.vector_store %arg7[%c0_14, %c0_15], %23 {strides = array<i32>} : memref<8x4xf32, #tpu.memory_space<vmem>>, vector<8x4xf32>,
    %c0_16 = arith.constant 0 : index
    %c0_17 = arith.constant 0 : index
    %25 = vector.load %arg4[%c0_16, %c0_17] : memref<2x1xf32, #tpu.memory_space<vmem>>, vector<2x1xf32>
    %cst_18 = arith.constant dense<0.000000e+00> : vector<8x1xf32>
    %26 = tpu.matmul %13, %25, %cst_18 {dimension_numbers = #tpu.dot_dimension_numbers<[1], [0], [0], [1], [0, 0, 1, 1], [], []>} : vector<8x2xf32>, vector<2x1xf32>, vector<8x1xf32> -> vector<8x1xf32>
    %27 = vector.broadcast %2 : f32 to vector<8x1xf32>
    %28 = arith.subf %27, %26 : vector<8x1xf32>
    %cst_19 = arith.constant 0.000000e+00 : f32
    %29 = vector.broadcast %cst_19 : f32 to vector<8x1xf32>
    %30 = arith.maximumf %28, %29 : vector<8x1xf32>
    %31 = vector.broadcast %3 : f32 to vector<8x1xf32>
    %32 = arith.minimumf %30, %31 : vector<8x1xf32>
    %c0_20 = arith.constant 0 : index
    %c0_21 = arith.constant 0 : index
    %33 = vector.load %arg8[%c0_20, %c0_21] : memref<8x1xf32, #tpu.memory_space<vmem>>, vector<8x1xf32>
    tpu.vector_store %arg8[%c0_20, %c0_21], %32 {strides = array<i32>} : memref<8x1xf32, #tpu.memory_space<vmem>>, vector<8x1xf32>,
    return
  }
  func.func @transform_0(%arg0: i32) -> i32 {
    %c0_i32 = arith.constant 0 : i32
    %c0_i32_0 = arith.constant 0 : i32
    return %c0_i32 : i32
  }
  func.func @transform_1(%arg0: i32) -> (i32, i32) {
    %c0_i32 = arith.constant 0 : i32
    %c0_i32_0 = arith.constant 0 : i32
    %c0_i32_1 = arith.constant 0 : i32
    return %c0_i32, %c0_i32_0 : i32, i32
  }
  func.func @transform_2(%arg0: i32) -> (i32, i32) {
    %c0_i32 = arith.constant 0 : i32
    %c0_i32_0 = arith.constant 0 : i32
    %c0_i32_1 = arith.constant 0 : i32
    return %c0_i32, %c0_i32_0 : i32, i32
  }
  func.func @transform_3(%arg0: i32) -> (i32, i32) {
    %c0_i32 = arith.constant 0 : i32
    %c0_i32_0 = arith.constant 0 : i32
    %c0_i32_1 = arith.constant 0 : i32
    return %c0_i32, %c0_i32_0 : i32, i32
  }
  func.func @transform_4(%arg0: i32) -> (i32, i32) {
    %c0_i32 = arith.constant 0 : i32
    %c0_i32_0 = arith.constant 0 : i32
    return %arg0, %c0_i32 : i32, i32
  }
  func.func @transform_5(%arg0: i32) -> (i32, i32) {
    %c0_i32 = arith.constant 0 : i32
    %c0_i32_0 = arith.constant 0 : i32
    return %arg0, %c0_i32 : i32, i32
  }
  func.func @transform_6(%arg0: i32) -> (i32, i32) {
    %c0_i32 = arith.constant 0 : i32
    %c0_i32_0 = arith.constant 0 : i32
    return %arg0, %c0_i32 : i32, i32
  }
  func.func @transform_7(%arg0: i32) -> (i32, i32) {
    %c0_i32 = arith.constant 0 : i32
    %c0_i32_0 = arith.constant 0 : i32
    return %arg0, %c0_i32 : i32, i32
  }
}

</mosaic_0001>

<bundles_post_ra>
// kernel: transformed_nv_forward.1
= control target key start
LH: loop header
LB: loop body
LE: loop exit
PB: predicated region body
PF: predicated region fallthrough
CT: control target
= control target key end

     0   :  { %13 = vsyncpa [#allocation5], 0  ;;  %s703_s0 = inlined_call_operand.hbm [shape: f32[2], index: 0, kind: input, shape index: {}]   ;;  %s704_s1 = inlined_call_operand.hbm [shape: f32[2,4], index: 1, kind: input, shape index: {}]   ;;  %s705_s2 = inlined_call_operand.hbm [shape: f32[12,4], index: 2, kind: input, shape index: {}]   ;;  %s706_s3 = inlined_call_operand.hbm [shape: f32[2,1], index: 3, kind: input, shape index: {}]   ;;  %s707_s4 = inlined_call_operand.hbm [shape: f32[8,12], index: 4, kind: input, shape index: {}]   ;;  %s708_s5 = inlined_call_operand.hbm [shape: f32[8,2], index: 5, kind: input, shape index: {}]   ;;  %s709_s6 = inlined_call_operand.hbm [shape: f32[8,4], index: 6, kind: output, shape index: {0}]   ;;  %s710_s7 = inlined_call_operand.hbm [shape: f32[8,1], index: 7, kind: output, shape index: {1}]  }
   0x1   :  { %14 = vsyncpa [#allocation3], 0 }
   0x2   :  { %15 = vsyncpa [#allocation8], 0 }
   0x3   :  { %16 = vsyncpa [#allocation11], 0 }
   0x4   :  { %17 = vsyncpa [#allocation4], 0 }
   0x5   :  { %18 = vsyncpa [#allocation15], 0  ;;  %s550_s24 = smov [#allocation7]   ;;  %s374_s28 = scalar_lea.hbm %s705_s2, 256 }
   0x6   :  { %s42_s25 = sshll.u32 %s550_s24, 4  ;;  %p375_p0 = scmp.ne.s32.totalorder %s705_s2, %s374_s28  ;;  %s43_s25 = int_to_ptr.vmem [resolvable:$true] %s42_s25 }
   0x7   :  { %p378_p1 = scmp.lt.u32.totalorder %s374_s28, %s705_s2 }
   0x9   :  { %p380_p2 = pnand %p378_p1, %p375_p0 }
   0xb   :  { %383 = shalt.err (!%p380_p2)
}
   0xc   :  { %s384_s10 = scalar_lea.vmem %s43_s25, 256  ;;  %p389_p4 = scmp.lt.s32.totalorder %s43_s25, %s43_s25 }
   0xd   :  { %p385_p3 = scmp.ne.s32.totalorder %s43_s25, %s384_s10  ;;  %p390_p5 = scmp.lt.s32.totalorder %s384_s10, %s384_s10 }
   0xf   :  { %p391_p6 = por %p390_p5, %p389_p4 }
  0x11   :  { %p392_p7 = pnand %p391_p6, %p385_p3 }
  0x13   :  { %395 = shalt.err (!%p392_p7)
}
  0x14   :  { %s551_s11 = smov 128   ;;  %s552_s12 = smov 8  }
  0x15   :  { %48 = dma.hbm_to_vmem [thread:$0]  %s705_s2, 256, %s43_s25, [#allocation8], %s551_s11, %s551_s11, %s552_s12  }
  0x16   :  { %s553_s15 = smov [#allocation10]   ;;  %s396_s19 = scalar_lea.hbm %s707_s4, 128 }
  0x17   :  { %s65_s16 = sshll.u32 %s553_s15, 4  ;;  %p397_p8 = scmp.ne.s32.totalorder %s707_s4, %s396_s19  ;;  %s66_s16 = int_to_ptr.vmem [resolvable:$true] %s65_s16 }
  0x18   :  { %p400_p9 = scmp.lt.u32.totalorder %s396_s19, %s707_s4 }
  0x1a   :  { %p402_p10 = pnand %p400_p9, %p397_p8 }
  0x1c   :  { %405 = shalt.err (!%p402_p10)
}
  0x1d   :  { %s406_s24 = scalar_lea.vmem %s66_s16, 128  ;;  %p411_p12 = scmp.lt.s32.totalorder %s66_s16, %s66_s16 }
  0x1e   :  { %p407_p11 = scmp.ne.s32.totalorder %s66_s16, %s406_s24  ;;  %p412_p13 = scmp.lt.s32.totalorder %s406_s24, %s406_s24 }
  0x20   :  { %p413_p0 = por %p412_p13, %p411_p12 }
  0x22   :  { %p414_p1 = pnand %p413_p0, %p407_p11 }
  0x24   :  { %417 = shalt.err (!%p414_p1)
}
  0x25   :  { %68 = dma.hbm_to_vmem [thread:$0]  %s707_s4, 128, %s66_s16, [#allocation11]  }
  0x26   :  { %s418_s28 = scalar_lea.hbm %s703_s0, 16 }
  0x27   :  { %p419_p2 = scmp.ne.s32.totalorder %s703_s0, %s418_s28  ;;  %p422_p3 = scmp.lt.u32.totalorder %s418_s28, %s703_s0 }
  0x29   :  { %p424_p4 = pnand %p422_p3, %p419_p2 }
  0x2b   :  { %427 = shalt.err (!%p424_p4)
}
  0x2c   :  { %s554_s10 = smov [#allocation2]   ;;  %s555_s4 = smov [#allocation6]  }
  0x2d   :  { %26 = dma.hbm_to_smem %s703_s0, 16, %s554_s10, [#allocation5]  }
  0x2e   :  { %s33_s13 = sshll.u32 %s555_s4, 4  ;;  %s556_s14 = smov [#allocation9]   ;;  %s34_s13 = int_to_ptr.vmem [resolvable:$true] %s33_s13 }
  0x2f   :  { %s55_s15 = sshll.u32 %s556_s14, 4  ;;  %s428_s18 = scalar_lea.hbm %s704_s1, 32  ;;  %s56_s15 = int_to_ptr.vmem [resolvable:$true] %s55_s15 }
  0x30   :  { %p429_p5 = scmp.ne.s32.totalorder %s704_s1, %s428_s18  ;;  %p432_p6 = scmp.lt.u32.totalorder %s428_s18, %s704_s1 }
  0x32   :  { %p434_p7 = pnand %p432_p6, %p429_p5 }
  0x34   :  { %437 = shalt.err (!%p434_p7)
}
  0x35   :  { %s438_s0 = scalar_lea.vmem %s34_s13, 32  ;;  %p443_p9 = scmp.lt.s32.totalorder %s34_s13, %s34_s13 }
  0x36   :  { %p439_p8 = scmp.ne.s32.totalorder %s34_s13, %s438_s0  ;;  %p444_p10 = scmp.lt.s32.totalorder %s438_s0, %s438_s0 }
  0x38   :  { %p445_p11 = por %p444_p10, %p443_p9 }
  0x3a   :  { %p446_p12 = pnand %p445_p11, %p439_p8 }
  0x3c   :  { %449 = shalt.err (!%p446_p12)
}
  0x3d   :  { %36 = dma.hbm_to_vmem [thread:$0]  %s704_s1, 32, %s34_s13, [#allocation3]  }
  0x3e   :  { %s450_s26 = scalar_lea.hbm %s706_s3, 32 }
  0x3f   :  { %p451_p13 = scmp.ne.s32.totalorder %s706_s3, %s450_s26  ;;  %p454_p0 = scmp.lt.u32.totalorder %s450_s26, %s706_s3 }
  0x41   :  { %p456_p1 = pnand %p454_p0, %p451_p13 }
  0x43   :  { %459 = shalt.err (!%p456_p1)
}
  0x44   :  { %s460_s8 = scalar_lea.vmem %s56_s15, 32  ;;  %p465_p3 = scmp.lt.s32.totalorder %s56_s15, %s56_s15 }
  0x45   :  { %p461_p2 = scmp.ne.s32.totalorder %s56_s15, %s460_s8  ;;  %p466_p4 = scmp.lt.s32.totalorder %s460_s8, %s460_s8 }
  0x47   :  { %p467_p5 = por %p466_p4, %p465_p3 }
  0x49   :  { %p468_p6 = pnand %p467_p5, %p461_p2 }
  0x4b   :  { %471 = shalt.err (!%p468_p6)
}
  0x4c   :  { %58 = dma.hbm_to_vmem [thread:$0]  %s706_s3, 32, %s56_s15, [#allocation8]  }
  0x4d   :  { %s557_s10 = smov [#allocation12]   ;;  %s472_s13 = scalar_lea.hbm %s708_s5, 128 }
  0x4e   :  { %s75_s11 = sshll.u32 %s557_s10, 4  ;;  %p473_p7 = scmp.ne.s32.totalorder %s708_s5, %s472_s13  ;;  %s76_s11 = int_to_ptr.vmem [resolvable:$true] %s75_s11 }
  0x4f   :  { %p476_p8 = scmp.lt.u32.totalorder %s472_s13, %s708_s5 }
  0x51   :  { %p478_p9 = pnand %p476_p8, %p473_p7 }
  0x53   :  { %481 = shalt.err (!%p478_p9)
}
  0x54   :  { %s482_s19 = scalar_lea.vmem %s76_s11, 128  ;;  %p487_p11 = scmp.lt.s32.totalorder %s76_s11, %s76_s11 }
  0x55   :  { %p483_p10 = scmp.ne.s32.totalorder %s76_s11, %s482_s19  ;;  %p488_p12 = scmp.lt.s32.totalorder %s482_s19, %s482_s19 }
  0x57   :  { %p489_p13 = por %p488_p12, %p487_p11 }
  0x59   :  { %p490_p0 = pnand %p489_p13, %p483_p10 }
  0x5b   :  { %493 = shalt.err (!%p490_p0)
}
  0x5c   :  { %78 = dma.hbm_to_vmem [thread:$0]  %s708_s5, 128, %s76_s11, [#allocation11]  }
  0x5d   :  { %538 = dma.done.wait [#allocation5], 16  }
  0x5e   :  { %539 = vsyncadd [#allocation5], 4294967280 }
  0x5f   :  { %540 = dma.done.wait [#allocation3], 32  }
  0x60   :  { %541 = vsyncadd [#allocation3], 4294967264 }
  0x61   :  { %542 = dma.done.wait [#allocation8], 288  }
  0x62   :  { %543 = vsyncadd [#allocation8], 4294967008 }
  0x63   :  { %544 = dma.done.wait [#allocation11], 256  }
  0x64   :  { %545 = vsyncadd [#allocation11], 4294967040 }
  0x65   :  { %97 = sfence }
  0x66   :  { %v103_v0 = vld [vmem:[#allocation7] sm:$0xff]  ;;  %v104_v1 = vld [vmem:[#allocation7 + $0x8] sm:$0xf]  ;;  %vm109_vm0 = vcmask 1043456   ;;  %v558_v2 = vmov 0.0|0.0   ;;  %vm559_vm1 = vmmov 1  }
  0x67   :  { %352 = vmatprep.subr.bf16.mxu0 %v558_v2  ;;  %v353_v3 = vpack.c.bf16 %v104_v1, %v103_v0  ;;  %vm354_vm2 = vmpackc.low %vm109_vm0, %vm559_vm1  ;;  %vm560_vm3 = vmmov 0   ;;  %v561_v4 = vmov 0.0   ;;  %v102_v5 = vld [vmem:[#allocation10] sm:$0xff]  ;;  %vm105_vm4 = vcmask 97280   ;;  %v210_v6 = vld [vmem:[#allocation9] sm:$0x3] }
  0x68   :  { %344 = vmatprep.mubr.msk.f32.mxu0 %vm560_vm3, %v561_v4  ;;  %347 = vmatprep.subr.mxu1 %v561_v4  ;;  %vm215_vm5 = vcmask 1041408   ;;  %v194_v7 = vld [vmem:[#allocation12] sm:$0xff]  ;;  %vm211_vm6 = vcmask 15360   ;;  %vm195_vm7 = vcmask 31744   ;;  %v562_v16 = vmov 0   ;;  %s100_s5 = sld [smem:[#allocation2]] }
  0x69   :  { %355 = vmatpush3.bf16.msk.msra.mxu0 %vm354_vm2, %v353_v3  ;;  %349 = vmatprep.mubr.msk.f32.mxu1 %vm560_vm3, %v561_v4  ;;  %v331_v8 = vld [vmem:[#allocation6] ss:$0 sm:$0xff]  ;;  %v332_v12 = vld [vmem:[#allocation6 + $0x1] ss:$0 sm:$0xff]  ;;  %s328_s20 = sld [smem:[#allocation2 + $0x1]]  ;;  %vm294_vm8 = vcmask 7168  }
  0x6a   :  { %348 = vmatpush3.msk.msra.mxu1 %vm215_vm5, %v210_v6  ;;  %371 = vset.pattern.permute.xlu0 %v562_v16  ;;  %s563_s21 = smov [#allocation14]  }
  0x6b   :  { %350 = vmatmul.mubr.msk.f32.vlgmr.msra.gmra.mrb[0].mxu1 %vm211_vm6, %v194_v7  ;;  %s312_s22 = sshll.u32 %s563_s21, 4  ;;  %s313_s22 = int_to_ptr.vmem [resolvable:$true] %s312_s22 }
  0x6c   :  { %345 = vmatmul.mubr.msk.f32.vlgmr.msra.gmra.mrb[0].mxu0 %vm105_vm4, %v102_v5  ;;  %s494_s0 = scalar_lea.vmem %s313_s22, 128  ;;  %p499_p2 = scmp.lt.s32.totalorder %s313_s22, %s313_s22 }
  0x6d   :  { %p495_p1 = scmp.ne.s32.totalorder %s313_s22, %s494_s0  ;;  %p500_p3 = scmp.lt.s32.totalorder %s494_s0, %s494_s0 }
  0x6e   :  { %v289_v21 = vstv %s100_s5 }
  0x6f   :  { %v292_v27 = vstv %s328_s20  ;;  %p501_p4 = por %p500_p3, %p499_p2 }
  0x71   :  { %p502_p5 = pnand %p501_p4, %p495_p1 }
 0x13e   :  { %v285_v17 = vpop.f32.mrb[0].mxu1 }
 0x13f   :  { %v179_v9 = vpop.f32.mrb[0].mxu0  ;;  %v351_v18 = vpop.f32.mrb[1].mxu1  ;;  %v290_v22 = vsub.f32 %v289_v21, %v285_v17 }
 0x140   :  { %v187_v10 = vsub.f32 %v331_v8, %v179_v9  ;;  %v346_v11 = vpop.f32.mrb[1].mxu0 }
 0x141   :  { %v291_v25 = vmax.f32 %v290_v22, 0.0 }
 0x142   :  { %v188_v13 = vmax.f32 %v187_v10, 0.0 }
 0x143   :  { %v293_v28 = vmin.f32 %v291_v25, %v292_v27 }
 0x144   :  { %v193_v14 = vmin.f32 %v188_v13, %v332_v12 }
 0x145   :  { %295 = vst.msk [vmem:[#allocation14] sm:$0xff] %vm294_vm8, %v293_v28 }
 0x146   :  { %v196_v15 = vsel %vm195_vm7, %v193_v14, 0.0 }
 0x147   :  { %197 = vadd.xlane.f32.xlu0 %v196_v15 }
 0x1d4   :  { %v198_v19 = vpop.xlane.xlu0 %197 }
 0x1d5   :  { %v199_v20 = vadd.f32 1e-15, %v198_v19 }
 0x1d7   :  { %372 = vrcp.f32 %v199_v20 }
 0x1e1   :  { %v373_v23 = vpop.eup %372 }
 0x1e2   :  { %v201_v24 = vmul.f32 %v373_v23, %v194_v7 }
 0x1e4   :  { %v202_v26 = vmin.f32 %v201_v24, 1.0 }
 0x1e6   :  { %205 = vperm.xlu0 %371, %v202_v26  }
 0x1e7   :  { %505 = shalt.err (!%p502_p5)
}
 0x1e8   :  { %s506_s2 = scalar_lea.hbm %s710_s7, 128 }
 0x1e9   :  { %p507_p6 = scmp.ne.s32.totalorder %s710_s7, %s506_s2  ;;  %p510_p7 = scmp.lt.u32.totalorder %s506_s2, %s710_s7 }
 0x1eb   :  { %p512_p8 = pnand %p510_p7, %p507_p6 }
 0x1ed   :  { %515 = shalt.err (!%p512_p8)
}
 0x1ee   :  { %315 = dma.vmem_to_hbm [thread:$0]  %s313_s22, 128, %s710_s7, [#allocation15]  }
 0x1ef   :  { %s564_s8 = smov [#allocation13]  }
 0x1f0   :  { %s302_s1 = sshll.u32 %s564_s8, 4  ;;  %s303_s1 = int_to_ptr.vmem [resolvable:$true] %s302_s1 }
 0x1f1   :  { %s516_s9 = scalar_lea.vmem %s303_s1, 128  ;;  %p521_p10 = scmp.lt.s32.totalorder %s303_s1, %s303_s1 }
 0x1f2   :  { %p517_p9 = scmp.ne.s32.totalorder %s303_s1, %s516_s9  ;;  %p522_p11 = scmp.lt.s32.totalorder %s516_s9, %s516_s9 }
 0x1f4   :  { %p523_p12 = por %p522_p11, %p521_p10 }
 0x1f6   :  { %p524_p13 = pnand %p523_p12, %p517_p9 }
 0x265   :  { %v206_v29 = vpop.permute.xlu0 %205 }
 0x266   :  { %v208_v30 = vmul.f32 %v206_v29, %v193_v14 }
 0x268   :  { %209 = vst.msk [vmem:[#allocation13] sm:$0xff] %vm195_vm7, %v208_v30 }
 0x269   :  { %527 = shalt.err (!%p524_p13)
}
 0x26a   :  { %s528_s12 = scalar_lea.hbm %s709_s6, 128 }
 0x26b   :  { %p529_p0 = scmp.ne.s32.totalorder %s709_s6, %s528_s12  ;;  %p532_p1 = scmp.lt.u32.totalorder %s528_s12, %s709_s6 }
 0x26d   :  { %p534_p2 = pnand %p532_p1, %p529_p0 }
 0x26f   :  { %537 = shalt.err (!%p534_p2)
}
 0x270   :  { %305 = dma.vmem_to_hbm [thread:$0]  %s303_s1, 128, %s709_s6, [#allocation4]  }
 0x271   :  { %546 = dma.done.wait [#allocation4], 128  }
 0x272   :  { %547 = vsyncadd [#allocation4], 4294967168 }
 0x273   :  { %548 = dma.done.wait [#allocation15], 128  }
 0x274   :  { %549 = vsyncadd [#allocation15], 4294967168 }
 0x275   :  { %322 = vsyncpa [#allocation3], 1 }
 0x276   :  { %323 = vsyncpa [#allocation8], 1 }
 0x277   :  { %324 = vsyncpa [#allocation11], 1 }
 0x278   :  { %325 = vsyncpa [#allocation4], 1 }
 0x279   :  { %326 = vsyncpa [#allocation15], 1 }
 0x27a   :  { %327 = vsyncpa [#allocation5], 1 }

</bundles_post_ra>
